<compile_context>
chip_gen: v7x
topology: tpu7x:2x2x1
jax: 0.10.0
libtpu: 0.0.40
codegen_flags: <defaults>
</compile_context>

<pallas_src>
import jax
import jax.numpy as jnp
from jax.experimental import pallas as pl
from jax.experimental.pallas import tpu as pltpu


# ----------------------------------------------------------------------------
# Fused decoder kernel factory (num_layers / num_dir / H are static).
# ----------------------------------------------------------------------------
def _make_decoder_kernel(num_layers, num_dir, hidden_dim):
    L, D, H = num_layers, num_dir, hidden_dim

    def kernel(*refs):
        # refs layout:
        #   [0] x_ref      (tb, Din0)                 f32
        #   [1] h_ref      (L*D, tb, H)               f32
        #   [2 + 4*l + 0]  wih_ref  (Din_l, D*3H)     bf16  cols = [dir][r,z,n][H]
        #   [2 + 4*l + 1]  whh_ref  (D, H, 3H)        bf16  cols = [r,z,n][H]
        #   [2 + 4*l + 2]  bih_ref  (1, D*3H)         f32
        #   [2 + 4*l + 3]  bhh_ref  (D, 1, 3H)        f32
        #   [2 + 4*L]      dw_ref   (D*H, Fo)         bf16
        #   [3 + 4*L]      db_ref   (1, Fo)           f32
        #   [4 + 4*L]      o_ref    (tb, Fo)          f32 out
        #   [5 + 4*L]      hid_ref  (L*D, tb, H)      f32 out
        x_ref, h_ref = refs[0], refs[1]
        w_refs = refs[2:2 + 4 * L]
        dw_ref, db_ref = refs[2 + 4 * L], refs[3 + 4 * L]
        o_ref, hid_ref = refs[4 + 4 * L], refs[5 + 4 * L]

        layer_in = x_ref[...].astype(jnp.float32)            # (tb, Din0)
        for l in range(L):
            wih_ref, whh_ref, bih_ref, bhh_ref = w_refs[4 * l:4 * l + 4]
            # One wide input-gate matmul for all directions and gates.
            gi = jnp.dot(layer_in.astype(jnp.bfloat16), wih_ref[...],
                         preferred_element_type=jnp.float32) + bih_ref[...]
            outs = []
            for d in range(D):
                h_d = h_ref[l * D + d].astype(jnp.float32)    # (tb, H)
                # One hidden-gate matmul per direction covering all 3 gates.
                gh = jnp.dot(h_d.astype(jnp.bfloat16), whh_ref[d],
                             preferred_element_type=jnp.float32) + bhh_ref[d]
                gi_d = gi[:, d * 3 * H:(d + 1) * 3 * H]       # (tb, 3H)
                # Gate math in f32 (torch GRU order r, z, n); consume r
                # immediately to keep live ranges tight.
                r = jax.nn.sigmoid(gi_d[:, 0:H] + gh[:, 0:H])
                n = jnp.tanh(gi_d[:, 2 * H:3 * H] + r * gh[:, 2 * H:3 * H])
                z = jax.nn.sigmoid(gi_d[:, H:2 * H] + gh[:, H:2 * H])
                h_new = (1.0 - z) * n + z * h_d
                hid_ref[l * D + d] = h_new.astype(hid_ref.dtype)
                outs.append(h_new)
            # Layer output for this timestep = concat of directions (stays in
            # VMEM/vregs — no HBM roundtrip, no host-side transpose).
            layer_in = outs[0] if D == 1 else jnp.concatenate(outs, axis=-1)
            # (inter-layer dropout_rnn: identity at inference)

        # Fused dense head: input is already resident from the last layer.
        o = jnp.dot(layer_in.astype(jnp.bfloat16), dw_ref[...],
                    preferred_element_type=jnp.float32) + db_ref[...]
        o_ref[...] = o.astype(o_ref.dtype)

    return kernel


# ----------------------------------------------------------------------------
# Wrapper
# ----------------------------------------------------------------------------
def _pick_batch_tile(B):
    # Full-extent block for small batches (always legal); 256 rows (multiple of
    # 8 sublanes, v7x-VMEM friendly) for large batches. Remainder blocks are
    # masked automatically by Pallas.
    return B if B <= 256 else 256


def _nbytes(shape, dtype):
    n = 1
    for d in shape:
        n *= d
    return n * jnp.dtype(dtype).itemsize


def decoder_fut_forward(x_t, h_t, params):
    """Forward pass of DecoderFut (seq_len == 1, inference mode).

    x_t: (B, input_dim) f32
    h_t: (num_layers * num_dir, B, H) f32
    returns (o_t: (B, input_dim) f32, hidden: (num_layers * num_dir, B, H) f32)
    """
    B, Din0 = x_t.shape
    LD, _, H = h_t.shape
    L = len(params["wih"])
    D = params["whh"][0].shape[0]
    assert LD == L * D
    Fo = params["dense_w"].shape[1]

    tb = _pick_batch_tile(B)
    nb = pl.cdiv(B, tb)

    weight_args = []
    in_specs = [
        pl.BlockSpec((tb, Din0), lambda b: (b, 0)),        # x batch tile
        pl.BlockSpec((LD, tb, H), lambda b: (0, b, 0)),    # h batch tile
    ]
    for l in range(L):
        din_l = params["wih"][l].shape[0]
        weight_args += [params["wih"][l], params["whh"][l],
                        params["bih"][l], params["bhh"][l]]
        in_specs += [
            pl.BlockSpec((din_l, 3 * D * H), lambda b: (0, 0)),
            pl.BlockSpec((D, H, 3 * H), lambda b: (0, 0, 0)),
            pl.BlockSpec((1, 3 * D * H), lambda b: (0, 0)),
            pl.BlockSpec((D, 1, 3 * H), lambda b: (0, 0, 0)),
        ]
    weight_args += [params["dense_w"], params["dense_b"]]
    in_specs += [
        pl.BlockSpec((D * H, Fo), lambda b: (0, 0)),
        pl.BlockSpec((1, Fo), lambda b: (0, 0)),
    ]

    out_specs = (
        pl.BlockSpec((tb, Fo), lambda b: (b, 0)),
        pl.BlockSpec((LD, tb, H), lambda b: (0, b, 0)),
    )
    out_shape = (
        jax.ShapeDtypeStruct((B, Fo), jnp.float32),
        jax.ShapeDtypeStruct((LD, B, H), jnp.float32),
    )

    # Explicit VMEM budget (default scoped limit is only 16 MiB on v5e); keep
    # it within v7x's 64 MiB physical VMEM.
    blk_bytes = _nbytes((tb, Din0), x_t.dtype) + _nbytes((LD, tb, H), h_t.dtype)
    for w in weight_args:
        blk_bytes += _nbytes(w.shape, w.dtype)
    blk_bytes += _nbytes((tb, Fo), jnp.float32) + _nbytes((LD, tb, H), jnp.float32)
    vmem_limit = int(min(max(2 * blk_bytes + (2 << 20), 32 << 20), 64 << 20))

    kernel = _make_decoder_kernel(L, D, H)

    return pl.pallas_call(
        kernel,
        out_shape=out_shape,
        grid_spec=pltpu.PrefetchScalarGridSpec(
            num_scalar_prefetch=0,
            grid=(nb,),
            in_specs=in_specs,
            out_specs=out_specs,
        ),
        compiler_params=pltpu.CompilerParams(
            dimension_semantics=("parallel",),
            vmem_limit_bytes=vmem_limit),
    )(x_t, h_t, *weight_args)


# ----------------------------------------------------------------------------
# Pure-JAX reference (mirrors torch.nn.GRU + nn.Linear for one timestep, with
# the same bf16-weight / bf16-matmul-operand, f32-accumulate numerics).
# ----------------------------------------------------------------------------
def _reference(x_t, h_t, params):
    L = len(params["wih"])
    D = params["whh"][0].shape[0]
    H = h_t.shape[-1]

    layer_in = x_t.astype(jnp.float32)
    new_hidden = []
    for l in range(L):
        gi = jnp.dot(layer_in.astype(jnp.bfloat16), params["wih"][l],
                     preferred_element_type=jnp.float32) + params["bih"][l]
        outs = []
        for d in range(D):
            h_d = h_t[l * D + d].astype(jnp.float32)
            gh = jnp.dot(h_d.astype(jnp.bfloat16), params["whh"][l][d],
                         preferred_element_type=jnp.float32) + params["bhh"][l][d]
            gi_d = gi[:, d * 3 * H:(d + 1) * 3 * H]
            r = jax.nn.sigmoid(gi_d[:, 0:H] + gh[:, 0:H])
            z = jax.nn.sigmoid(gi_d[:, H:2 * H] + gh[:, H:2 * H])
            n = jnp.tanh(gi_d[:, 2 * H:3 * H] + r * gh[:, 2 * H:3 * H])
            h_new = (1.0 - z) * n + z * h_d
            new_hidden.append(h_new)
            outs.append(h_new)
        layer_in = outs[0] if D == 1 else jnp.concatenate(outs, axis=-1)
    hidden = jnp.stack(new_hidden, axis=0)
    o_t = jnp.dot(layer_in.astype(jnp.bfloat16), params["dense_w"],
                  preferred_element_type=jnp.float32) + params["dense_b"]
    return o_t, hidden


# ----------------------------------------------------------------------------
# Parameter init (torch-style uniform(-1/sqrt(H), 1/sqrt(H)) for GRU, uniform
# (-1/sqrt(fan_in), .) for Linear). GRU weights are stored gate-stacked,
# direction-folded & pre-transposed: wih[l] columns ordered [dir][r,z,n][H]
# (matching the split of torch's weight_ih_l{k}[_reverse] (3H, Din) into
# [W_ir; W_iz; W_in].T), whh[l] per-direction (H, 3H). Weights bf16, biases f32.
# ----------------------------------------------------------------------------
def init_params(key, input_dim, hidden_dim, num_layers, num_dir):
    H, D = hidden_dim, num_dir
    params = {"wih": [], "whh": [], "bih": [], "bhh": []}
    bound = H ** -0.5
    for l in range(num_layers):
        din = input_dim if l == 0 else D * H
        key, k1, k2, k3, k4 = jax.random.split(key, 5)
        wih = jax.random.uniform(k1, (din, D, 3, H), jnp.float32, -bound, bound)
        whh = jax.random.uniform(k2, (D, H, 3, H), jnp.float32, -bound, bound)
        bih = jax.random.uniform(k3, (D, 3, H), jnp.float32, -bound, bound)
        bhh = jax.random.uniform(k4, (D, 3, H), jnp.float32, -bound, bound)
        params["wih"].append(wih.reshape(din, D * 3 * H).astype(jnp.bfloat16))
        params["whh"].append(whh.reshape(D, H, 3 * H).astype(jnp.bfloat16))
        params["bih"].append(bih.reshape(1, D * 3 * H))
        params["bhh"].append(bhh.reshape(D, 1, 3 * H))
    key, k5, k6 = jax.random.split(key, 3)
    fan_in = D * H
    lb = fan_in ** -0.5
    params["dense_w"] = jax.random.uniform(
        k5, (fan_in, input_dim), jnp.float32, -lb, lb).astype(jnp.bfloat16)
    params["dense_b"] = jax.random.uniform(
        k6, (1, input_dim), jnp.float32, -lb, lb)
    return params


if __name__ == "__main__":
    # Small module config: DecoderFut(input_dim=32, hidden_dim=32, num_layers=2,
    #                                 is_bidirectional=True, dropout=0.1, dropout_rnn=0.1)
    input_dim = 32
    hidden_dim = 32
    num_layers = 2
    is_bidirectional = True
    num_dir = 2 if is_bidirectional else 1
    B = 4  # batch

    key = jax.random.PRNGKey(0)
    key, k_x, k_h, k_p = jax.random.split(key, 4)

    x_t = jax.random.normal(k_x, (B, input_dim), dtype=jnp.float32)
    h_t = jax.random.normal(
        k_h, (num_layers * num_dir, B, hidden_dim), dtype=jnp.float32)
    params = init_params(k_p, input_dim, hidden_dim, num_layers, num_dir)

    o_t, hidden = decoder_fut_forward(x_t, h_t, params)
    o_t = jax.block_until_ready(o_t)
    hidden = jax.block_until_ready(hidden)

    o_ref, hidden_ref = _reference(x_t, h_t, params)
    assert o_t.shape == (B, input_dim)
    assert hidden.shape == (num_layers * num_dir, B, hidden_dim)
    assert jnp.allclose(o_t, o_ref, atol=1e-4, rtol=1e-4), "o_t mismatch"
    assert jnp.allclose(hidden, hidden_ref, atol=1e-4, rtol=1e-4), "hidden mismatch"

    print("KERNEL_OK")
</pallas_src>

<mosaic_0001>
module attributes {stable_mosaic.version = 11 : i64} {
  func.func @kernel(%arg0: i32, %arg1: memref<4x32xf32, #tpu.memory_space<vmem>>, %arg2: memref<4x4x32xf32, #tpu.memory_space<vmem>>, %arg3: memref<32x192xbf16, #tpu.memory_space<vmem>>, %arg4: memref<2x32x96xbf16, #tpu.memory_space<vmem>>, %arg5: memref<1x192xf32, #tpu.memory_space<vmem>>, %arg6: memref<2x1x96xf32, #tpu.memory_space<vmem>>, %arg7: memref<64x192xbf16, #tpu.memory_space<vmem>>, %arg8: memref<2x32x96xbf16, #tpu.memory_space<vmem>>, %arg9: memref<1x192xf32, #tpu.memory_space<vmem>>, %arg10: memref<2x1x96xf32, #tpu.memory_space<vmem>>, %arg11: memref<64x32xbf16, #tpu.memory_space<vmem>>, %arg12: memref<1x32xf32, #tpu.memory_space<vmem>>, %arg13: memref<4x32xf32, #tpu.memory_space<vmem>>, %arg14: memref<4x4x32xf32, #tpu.memory_space<vmem>>) attributes {dimension_semantics = [#tpu.dimension_semantics<parallel>], iteration_bounds = array<i64: 1>, scalar_prefetch = 0 : i64, scratch_operands = 0 : i64, tpu.core_type = #tpu.core_type<tc>, window_params = [{transform_indices = @transform_0, window_bounds = array<i64: 4, 32>}, {transform_indices = @transform_1, window_bounds = array<i64: 4, 4, 32>}, {pipeline_mode = #tpu.pipeline_mode<synchronous>, transform_indices = @transform_2, window_bounds = array<i64: 32, 192>}, {pipeline_mode = #tpu.pipeline_mode<synchronous>, transform_indices = @transform_3, window_bounds = array<i64: 2, 32, 96>}, {pipeline_mode = #tpu.pipeline_mode<synchronous>, transform_indices = @transform_4, window_bounds = array<i64: 1, 192>}, {pipeline_mode = #tpu.pipeline_mode<synchronous>, transform_indices = @transform_5, window_bounds = array<i64: 2, 1, 96>}, {pipeline_mode = #tpu.pipeline_mode<synchronous>, transform_indices = @transform_6, window_bounds = array<i64: 64, 192>}, {pipeline_mode = #tpu.pipeline_mode<synchronous>, transform_indices = @transform_7, window_bounds = array<i64: 2, 32, 96>}, {pipeline_mode = #tpu.pipeline_mode<synchronous>, transform_indices = @transform_8, window_bounds = array<i64: 1, 192>}, {pipeline_mode = #tpu.pipeline_mode<synchronous>, transform_indices = @transform_9, window_bounds = array<i64: 2, 1, 96>}, {pipeline_mode = #tpu.pipeline_mode<synchronous>, transform_indices = @transform_10, window_bounds = array<i64: 64, 32>}, {pipeline_mode = #tpu.pipeline_mode<synchronous>, transform_indices = @transform_11, window_bounds = array<i64: 1, 32>}, {transform_indices = @transform_12, window_bounds = array<i64: 4, 32>}, {transform_indices = @transform_13, window_bounds = array<i64: 4, 4, 32>}]} {
    %c0 = arith.constant 0 : index
    %c0_0 = arith.constant 0 : index
    %0 = vector.load %arg1[%c0, %c0_0] : memref<4x32xf32, #tpu.memory_space<vmem>>, vector<4x32xf32>
    %1 = arith.truncf %0 : vector<4x32xf32> to vector<4x32xbf16>
    %c0_1 = arith.constant 0 : index
    %c0_2 = arith.constant 0 : index
    %2 = vector.load %arg3[%c0_1, %c0_2] : memref<32x192xbf16, #tpu.memory_space<vmem>>, vector<32x192xbf16>
    %cst = arith.constant dense<0.000000e+00> : vector<4x192xf32>
    %3 = tpu.matmul %1, %2, %cst {dimension_numbers = #tpu.dot_dimension_numbers<[1], [0], [0], [1], [0, 0, 1, 1], [], []>} : vector<4x32xbf16>, vector<32x192xbf16>, vector<4x192xf32> -> vector<4x192xf32>
    %c0_3 = arith.constant 0 : index
    %c0_4 = arith.constant 0 : index
    %4 = vector.load %arg5[%c0_3, %c0_4] : memref<1x192xf32, #tpu.memory_space<vmem>>, vector<1x192xf32>
    %5 = vector.broadcast %4 : vector<1x192xf32> to vector<4x192xf32>
    %6 = arith.addf %3, %5 : vector<4x192xf32>
    %c0_5 = arith.constant 0 : index
    %c0_6 = arith.constant 0 : index
    %c0_7 = arith.constant 0 : index
    %7 = vector.load %arg2[%c0_5, %c0_6, %c0_7] : memref<4x4x32xf32, #tpu.memory_space<vmem>>, vector<1x4x32xf32>
    %8 = vector.shape_cast %7 : vector<1x4x32xf32> to vector<4x32xf32>
    %9 = arith.truncf %8 : vector<4x32xf32> to vector<4x32xbf16>
    %c0_8 = arith.constant 0 : index
    %c0_9 = arith.constant 0 : index
    %c0_10 = arith.constant 0 : index
    %10 = vector.load %arg4[%c0_8, %c0_9, %c0_10] : memref<2x32x96xbf16, #tpu.memory_space<vmem>>, vector<1x32x96xbf16>
    %11 = vector.shape_cast %10 : vector<1x32x96xbf16> to vector<32x96xbf16>
    %cst_11 = arith.constant dense<0.000000e+00> : vector<4x96xf32>
    %12 = tpu.matmul %9, %11, %cst_11 {dimension_numbers = #tpu.dot_dimension_numbers<[1], [0], [0], [1], [0, 0, 1, 1], [], []>} : vector<4x32xbf16>, vector<32x96xbf16>, vector<4x96xf32> -> vector<4x96xf32>
    %c0_12 = arith.constant 0 : index
    %c0_13 = arith.constant 0 : index
    %c0_14 = arith.constant 0 : index
    %13 = vector.load %arg6[%c0_12, %c0_13, %c0_14] : memref<2x1x96xf32, #tpu.memory_space<vmem>>, vector<1x1x96xf32>
    %14 = vector.shape_cast %13 : vector<1x1x96xf32> to vector<1x96xf32>
    %15 = vector.broadcast %14 : vector<1x96xf32> to vector<4x96xf32>
    %16 = arith.addf %12, %15 : vector<4x96xf32>
    %17 = vector.extract_strided_slice %6 {offsets = [0, 0], sizes = [4, 96], strides = [1, 1]} : vector<4x192xf32> to vector<4x96xf32>
    %18 = vector.extract_strided_slice %17 {offsets = [0, 0], sizes = [4, 32], strides = [1, 1]} : vector<4x96xf32> to vector<4x32xf32>
    %19 = vector.extract_strided_slice %16 {offsets = [0, 0], sizes = [4, 32], strides = [1, 1]} : vector<4x96xf32> to vector<4x32xf32>
    %20 = arith.addf %18, %19 : vector<4x32xf32>
    %21 = arith.negf %20 : vector<4x32xf32>
    %22 = math.exp %21 : vector<4x32xf32>
    %cst_15 = arith.constant 1.000000e+00 : f32
    %23 = vector.broadcast %cst_15 : f32 to vector<4x32xf32>
    %24 = arith.addf %23, %22 : vector<4x32xf32>
    %25 = arith.divf %23, %24 : vector<4x32xf32>
    %26 = vector.extract_strided_slice %17 {offsets = [0, 64], sizes = [4, 32], strides = [1, 1]} : vector<4x96xf32> to vector<4x32xf32>
    %27 = vector.extract_strided_slice %16 {offsets = [0, 64], sizes = [4, 32], strides = [1, 1]} : vector<4x96xf32> to vector<4x32xf32>
    %28 = arith.mulf %25, %27 : vector<4x32xf32>
    %29 = arith.addf %26, %28 : vector<4x32xf32>
    %30 = math.tanh %29 : vector<4x32xf32>
    %31 = vector.extract_strided_slice %17 {offsets = [0, 32], sizes = [4, 32], strides = [1, 1]} : vector<4x96xf32> to vector<4x32xf32>
    %32 = vector.extract_strided_slice %16 {offsets = [0, 32], sizes = [4, 32], strides = [1, 1]} : vector<4x96xf32> to vector<4x32xf32>
    %33 = arith.addf %31, %32 : vector<4x32xf32>
    %34 = arith.negf %33 : vector<4x32xf32>
    %35 = math.exp %34 : vector<4x32xf32>
    %cst_16 = arith.constant 1.000000e+00 : f32
    %36 = vector.broadcast %cst_16 : f32 to vector<4x32xf32>
    %37 = arith.addf %36, %35 : vector<4x32xf32>
    %38 = arith.divf %36, %37 : vector<4x32xf32>
    %cst_17 = arith.constant 1.000000e+00 : f32
    %39 = vector.broadcast %cst_17 : f32 to vector<4x32xf32>
    %40 = arith.subf %39, %38 : vector<4x32xf32>
    %41 = arith.mulf %40, %30 : vector<4x32xf32>
    %42 = arith.mulf %38, %8 : vector<4x32xf32>
    %43 = arith.addf %41, %42 : vector<4x32xf32>
    %c0_18 = arith.constant 0 : index
    %c0_19 = arith.constant 0 : index
    %c0_20 = arith.constant 0 : index
    %44 = vector.load %arg14[%c0_18, %c0_19, %c0_20] : memref<4x4x32xf32, #tpu.memory_space<vmem>>, vector<1x4x32xf32>
    %45 = vector.shape_cast %44 : vector<1x4x32xf32> to vector<4x32xf32>
    %46 = vector.shape_cast %43 : vector<4x32xf32> to vector<1x4x32xf32>
    tpu.vector_store %arg14[%c0_18, %c0_19, %c0_20], %46 {strides = array<i32>} : memref<4x4x32xf32, #tpu.memory_space<vmem>>, vector<1x4x32xf32>,
    %c1 = arith.constant 1 : index
    %c0_21 = arith.constant 0 : index
    %c0_22 = arith.constant 0 : index
    %47 = vector.load %arg2[%c1, %c0_21, %c0_22] : memref<4x4x32xf32, #tpu.memory_space<vmem>>, vector<1x4x32xf32>
    %48 = vector.shape_cast %47 : vector<1x4x32xf32> to vector<4x32xf32>
    %49 = arith.truncf %48 : vector<4x32xf32> to vector<4x32xbf16>
    %c1_23 = arith.constant 1 : index
    %c0_24 = arith.constant 0 : index
    %c0_25 = arith.constant 0 : index
    %50 = vector.load %arg4[%c1_23, %c0_24, %c0_25] : memref<2x32x96xbf16, #tpu.memory_space<vmem>>, vector<1x32x96xbf16>
    %51 = vector.shape_cast %50 : vector<1x32x96xbf16> to vector<32x96xbf16>
    %cst_26 = arith.constant dense<0.000000e+00> : vector<4x96xf32>
    %52 = tpu.matmul %49, %51, %cst_26 {dimension_numbers = #tpu.dot_dimension_numbers<[1], [0], [0], [1], [0, 0, 1, 1], [], []>} : vector<4x32xbf16>, vector<32x96xbf16>, vector<4x96xf32> -> vector<4x96xf32>
    %c1_27 = arith.constant 1 : index
    %c0_28 = arith.constant 0 : index
    %c0_29 = arith.constant 0 : index
    %53 = vector.load %arg6[%c1_27, %c0_28, %c0_29] : memref<2x1x96xf32, #tpu.memory_space<vmem>>, vector<1x1x96xf32>
    %54 = vector.shape_cast %53 : vector<1x1x96xf32> to vector<1x96xf32>
    %55 = vector.broadcast %54 : vector<1x96xf32> to vector<4x96xf32>
    %56 = arith.addf %52, %55 : vector<4x96xf32>
    %57 = vector.extract_strided_slice %6 {offsets = [0, 96], sizes = [4, 96], strides = [1, 1]} : vector<4x192xf32> to vector<4x96xf32>
    %58 = vector.extract_strided_slice %57 {offsets = [0, 0], sizes = [4, 32], strides = [1, 1]} : vector<4x96xf32> to vector<4x32xf32>
    %59 = vector.extract_strided_slice %56 {offsets = [0, 0], sizes = [4, 32], strides = [1, 1]} : vector<4x96xf32> to vector<4x32xf32>
    %60 = arith.addf %58, %59 : vector<4x32xf32>
    %61 = arith.negf %60 : vector<4x32xf32>
    %62 = math.exp %61 : vector<4x32xf32>
    %cst_30 = arith.constant 1.000000e+00 : f32
    %63 = vector.broadcast %cst_30 : f32 to vector<4x32xf32>
    %64 = arith.addf %63, %62 : vector<4x32xf32>
    %65 = arith.divf %63, %64 : vector<4x32xf32>
    %66 = vector.extract_strided_slice %57 {offsets = [0, 64], sizes = [4, 32], strides = [1, 1]} : vector<4x96xf32> to vector<4x32xf32>
    %67 = vector.extract_strided_slice %56 {offsets = [0, 64], sizes = [4, 32], strides = [1, 1]} : vector<4x96xf32> to vector<4x32xf32>
    %68 = arith.mulf %65, %67 : vector<4x32xf32>
    %69 = arith.addf %66, %68 : vector<4x32xf32>
    %70 = math.tanh %69 : vector<4x32xf32>
    %71 = vector.extract_strided_slice %57 {offsets = [0, 32], sizes = [4, 32], strides = [1, 1]} : vector<4x96xf32> to vector<4x32xf32>
    %72 = vector.extract_strided_slice %56 {offsets = [0, 32], sizes = [4, 32], strides = [1, 1]} : vector<4x96xf32> to vector<4x32xf32>
    %73 = arith.addf %71, %72 : vector<4x32xf32>
    %74 = arith.negf %73 : vector<4x32xf32>
    %75 = math.exp %74 : vector<4x32xf32>
    %cst_31 = arith.constant 1.000000e+00 : f32
    %76 = vector.broadcast %cst_31 : f32 to vector<4x32xf32>
    %77 = arith.addf %76, %75 : vector<4x32xf32>
    %78 = arith.divf %76, %77 : vector<4x32xf32>
    %cst_32 = arith.constant 1.000000e+00 : f32
    %79 = vector.broadcast %cst_32 : f32 to vector<4x32xf32>
    %80 = arith.subf %79, %78 : vector<4x32xf32>
    %81 = arith.mulf %80, %70 : vector<4x32xf32>
    %82 = arith.mulf %78, %48 : vector<4x32xf32>
    %83 = arith.addf %81, %82 : vector<4x32xf32>
    %c1_33 = arith.constant 1 : index
    %c0_34 = arith.constant 0 : index
    %c0_35 = arith.constant 0 : index
    %84 = vector.load %arg14[%c1_33, %c0_34, %c0_35] : memref<4x4x32xf32, #tpu.memory_space<vmem>>, vector<1x4x32xf32>
    %85 = vector.shape_cast %84 : vector<1x4x32xf32> to vector<4x32xf32>
    %86 = vector.shape_cast %83 : vector<4x32xf32> to vector<1x4x32xf32>
    tpu.vector_store %arg14[%c1_33, %c0_34, %c0_35], %86 {strides = array<i32>} : memref<4x4x32xf32, #tpu.memory_space<vmem>>, vector<1x4x32xf32>,
    %87 = tpu.concatenate %43, %83 in 1 : vector<4x32xf32>, vector<4x32xf32> -> vector<4x64xf32>
    %88 = arith.truncf %87 : vector<4x64xf32> to vector<4x64xbf16>
    %c0_36 = arith.constant 0 : index
    %c0_37 = arith.constant 0 : index
    %89 = vector.load %arg7[%c0_36, %c0_37] : memref<64x192xbf16, #tpu.memory_space<vmem>>, vector<64x192xbf16>
    %cst_38 = arith.constant dense<0.000000e+00> : vector<4x192xf32>
    %90 = tpu.matmul %88, %89, %cst_38 {dimension_numbers = #tpu.dot_dimension_numbers<[1], [0], [0], [1], [0, 0, 1, 1], [], []>} : vector<4x64xbf16>, vector<64x192xbf16>, vector<4x192xf32> -> vector<4x192xf32>
    %c0_39 = arith.constant 0 : index
    %c0_40 = arith.constant 0 : index
    %91 = vector.load %arg9[%c0_39, %c0_40] : memref<1x192xf32, #tpu.memory_space<vmem>>, vector<1x192xf32>
    %92 = vector.broadcast %91 : vector<1x192xf32> to vector<4x192xf32>
    %93 = arith.addf %90, %92 : vector<4x192xf32>
    %c2 = arith.constant 2 : index
    %c0_41 = arith.constant 0 : index
    %c0_42 = arith.constant 0 : index
    %94 = vector.load %arg2[%c2, %c0_41, %c0_42] : memref<4x4x32xf32, #tpu.memory_space<vmem>>, vector<1x4x32xf32>
    %95 = vector.shape_cast %94 : vector<1x4x32xf32> to vector<4x32xf32>
    %96 = arith.truncf %95 : vector<4x32xf32> to vector<4x32xbf16>
    %c0_43 = arith.constant 0 : index
    %c0_44 = arith.constant 0 : index
    %c0_45 = arith.constant 0 : index
    %97 = vector.load %arg8[%c0_43, %c0_44, %c0_45] : memref<2x32x96xbf16, #tpu.memory_space<vmem>>, vector<1x32x96xbf16>
    %98 = vector.shape_cast %97 : vector<1x32x96xbf16> to vector<32x96xbf16>
    %cst_46 = arith.constant dense<0.000000e+00> : vector<4x96xf32>
    %99 = tpu.matmul %96, %98, %cst_46 {dimension_numbers = #tpu.dot_dimension_numbers<[1], [0], [0], [1], [0, 0, 1, 1], [], []>} : vector<4x32xbf16>, vector<32x96xbf16>, vector<4x96xf32> -> vector<4x96xf32>
    %c0_47 = arith.constant 0 : index
    %c0_48 = arith.constant 0 : index
    %c0_49 = arith.constant 0 : index
    %100 = vector.load %arg10[%c0_47, %c0_48, %c0_49] : memref<2x1x96xf32, #tpu.memory_space<vmem>>, vector<1x1x96xf32>
    %101 = vector.shape_cast %100 : vector<1x1x96xf32> to vector<1x96xf32>
    %102 = vector.broadcast %101 : vector<1x96xf32> to vector<4x96xf32>
    %103 = arith.addf %99, %102 : vector<4x96xf32>
    %104 = vector.extract_strided_slice %93 {offsets = [0, 0], sizes = [4, 96], strides = [1, 1]} : vector<4x192xf32> to vector<4x96xf32>
    %105 = vector.extract_strided_slice %104 {offsets = [0, 0], sizes = [4, 32], strides = [1, 1]} : vector<4x96xf32> to vector<4x32xf32>
    %106 = vector.extract_strided_slice %103 {offsets = [0, 0], sizes = [4, 32], strides = [1, 1]} : vector<4x96xf32> to vector<4x32xf32>
    %107 = arith.addf %105, %106 : vector<4x32xf32>
    %108 = arith.negf %107 : vector<4x32xf32>
    %109 = math.exp %108 : vector<4x32xf32>
    %cst_50 = arith.constant 1.000000e+00 : f32
    %110 = vector.broadcast %cst_50 : f32 to vector<4x32xf32>
    %111 = arith.addf %110, %109 : vector<4x32xf32>
    %112 = arith.divf %110, %111 : vector<4x32xf32>
    %113 = vector.extract_strided_slice %104 {offsets = [0, 64], sizes = [4, 32], strides = [1, 1]} : vector<4x96xf32> to vector<4x32xf32>
    %114 = vector.extract_strided_slice %103 {offsets = [0, 64], sizes = [4, 32], strides = [1, 1]} : vector<4x96xf32> to vector<4x32xf32>
    %115 = arith.mulf %112, %114 : vector<4x32xf32>
    %116 = arith.addf %113, %115 : vector<4x32xf32>
    %117 = math.tanh %116 : vector<4x32xf32>
    %118 = vector.extract_strided_slice %104 {offsets = [0, 32], sizes = [4, 32], strides = [1, 1]} : vector<4x96xf32> to vector<4x32xf32>
    %119 = vector.extract_strided_slice %103 {offsets = [0, 32], sizes = [4, 32], strides = [1, 1]} : vector<4x96xf32> to vector<4x32xf32>
    %120 = arith.addf %118, %119 : vector<4x32xf32>
    %121 = arith.negf %120 : vector<4x32xf32>
    %122 = math.exp %121 : vector<4x32xf32>
    %cst_51 = arith.constant 1.000000e+00 : f32
    %123 = vector.broadcast %cst_51 : f32 to vector<4x32xf32>
    %124 = arith.addf %123, %122 : vector<4x32xf32>
    %125 = arith.divf %123, %124 : vector<4x32xf32>
    %cst_52 = arith.constant 1.000000e+00 : f32
    %126 = vector.broadcast %cst_52 : f32 to vector<4x32xf32>
    %127 = arith.subf %126, %125 : vector<4x32xf32>
    %128 = arith.mulf %127, %117 : vector<4x32xf32>
    %129 = arith.mulf %125, %95 : vector<4x32xf32>
    %130 = arith.addf %128, %129 : vector<4x32xf32>
    %c2_53 = arith.constant 2 : index
    %c0_54 = arith.constant 0 : index
    %c0_55 = arith.constant 0 : index
    %131 = vector.load %arg14[%c2_53, %c0_54, %c0_55] : memref<4x4x32xf32, #tpu.memory_space<vmem>>, vector<1x4x32xf32>
    %132 = vector.shape_cast %131 : vector<1x4x32xf32> to vector<4x32xf32>
    %133 = vector.shape_cast %130 : vector<4x32xf32> to vector<1x4x32xf32>
    tpu.vector_store %arg14[%c2_53, %c0_54, %c0_55], %133 {strides = array<i32>} : memref<4x4x32xf32, #tpu.memory_space<vmem>>, vector<1x4x32xf32>,
    %c3 = arith.constant 3 : index
    %c0_56 = arith.constant 0 : index
    %c0_57 = arith.constant 0 : index
    %134 = vector.load %arg2[%c3, %c0_56, %c0_57] : memref<4x4x32xf32, #tpu.memory_space<vmem>>, vector<1x4x32xf32>
    %135 = vector.shape_cast %134 : vector<1x4x32xf32> to vector<4x32xf32>
    %136 = arith.truncf %135 : vector<4x32xf32> to vector<4x32xbf16>
    %c1_58 = arith.constant 1 : index
    %c0_59 = arith.constant 0 : index
    %c0_60 = arith.constant 0 : index
    %137 = vector.load %arg8[%c1_58, %c0_59, %c0_60] : memref<2x32x96xbf16, #tpu.memory_space<vmem>>, vector<1x32x96xbf16>
    %138 = vector.shape_cast %137 : vector<1x32x96xbf16> to vector<32x96xbf16>
    %cst_61 = arith.constant dense<0.000000e+00> : vector<4x96xf32>
    %139 = tpu.matmul %136, %138, %cst_61 {dimension_numbers = #tpu.dot_dimension_numbers<[1], [0], [0], [1], [0, 0, 1, 1], [], []>} : vector<4x32xbf16>, vector<32x96xbf16>, vector<4x96xf32> -> vector<4x96xf32>
    %c1_62 = arith.constant 1 : index
    %c0_63 = arith.constant 0 : index
    %c0_64 = arith.constant 0 : index
    %140 = vector.load %arg10[%c1_62, %c0_63, %c0_64] : memref<2x1x96xf32, #tpu.memory_space<vmem>>, vector<1x1x96xf32>
    %141 = vector.shape_cast %140 : vector<1x1x96xf32> to vector<1x96xf32>
    %142 = vector.broadcast %141 : vector<1x96xf32> to vector<4x96xf32>
    %143 = arith.addf %139, %142 : vector<4x96xf32>
    %144 = vector.extract_strided_slice %93 {offsets = [0, 96], sizes = [4, 96], strides = [1, 1]} : vector<4x192xf32> to vector<4x96xf32>
    %145 = vector.extract_strided_slice %144 {offsets = [0, 0], sizes = [4, 32], strides = [1, 1]} : vector<4x96xf32> to vector<4x32xf32>
    %146 = vector.extract_strided_slice %143 {offsets = [0, 0], sizes = [4, 32], strides = [1, 1]} : vector<4x96xf32> to vector<4x32xf32>
    %147 = arith.addf %145, %146 : vector<4x32xf32>
    %148 = arith.negf %147 : vector<4x32xf32>
    %149 = math.exp %148 : vector<4x32xf32>
    %cst_65 = arith.constant 1.000000e+00 : f32
    %150 = vector.broadcast %cst_65 : f32 to vector<4x32xf32>
    %151 = arith.addf %150, %149 : vector<4x32xf32>
    %152 = arith.divf %150, %151 : vector<4x32xf32>
    %153 = vector.extract_strided_slice %144 {offsets = [0, 64], sizes = [4, 32], strides = [1, 1]} : vector<4x96xf32> to vector<4x32xf32>
    %154 = vector.extract_strided_slice %143 {offsets = [0, 64], sizes = [4, 32], strides = [1, 1]} : vector<4x96xf32> to vector<4x32xf32>
    %155 = arith.mulf %152, %154 : vector<4x32xf32>
    %156 = arith.addf %153, %155 : vector<4x32xf32>
    %157 = math.tanh %156 : vector<4x32xf32>
    %158 = vector.extract_strided_slice %144 {offsets = [0, 32], sizes = [4, 32], strides = [1, 1]} : vector<4x96xf32> to vector<4x32xf32>
    %159 = vector.extract_strided_slice %143 {offsets = [0, 32], sizes = [4, 32], strides = [1, 1]} : vector<4x96xf32> to vector<4x32xf32>
    %160 = arith.addf %158, %159 : vector<4x32xf32>
    %161 = arith.negf %160 : vector<4x32xf32>
    %162 = math.exp %161 : vector<4x32xf32>
    %cst_66 = arith.constant 1.000000e+00 : f32
    %163 = vector.broadcast %cst_66 : f32 to vector<4x32xf32>
    %164 = arith.addf %163, %162 : vector<4x32xf32>
    %165 = arith.divf %163, %164 : vector<4x32xf32>
    %cst_67 = arith.constant 1.000000e+00 : f32
    %166 = vector.broadcast %cst_67 : f32 to vector<4x32xf32>
    %167 = arith.subf %166, %165 : vector<4x32xf32>
    %168 = arith.mulf %167, %157 : vector<4x32xf32>
    %169 = arith.mulf %165, %135 : vector<4x32xf32>
    %170 = arith.addf %168, %169 : vector<4x32xf32>
    %c3_68 = arith.constant 3 : index
    %c0_69 = arith.constant 0 : index
    %c0_70 = arith.constant 0 : index
    %171 = vector.load %arg14[%c3_68, %c0_69, %c0_70] : memref<4x4x32xf32, #tpu.memory_space<vmem>>, vector<1x4x32xf32>
    %172 = vector.shape_cast %171 : vector<1x4x32xf32> to vector<4x32xf32>
    %173 = vector.shape_cast %170 : vector<4x32xf32> to vector<1x4x32xf32>
    tpu.vector_store %arg14[%c3_68, %c0_69, %c0_70], %173 {strides = array<i32>} : memref<4x4x32xf32, #tpu.memory_space<vmem>>, vector<1x4x32xf32>,
    %174 = tpu.concatenate %130, %170 in 1 : vector<4x32xf32>, vector<4x32xf32> -> vector<4x64xf32>
    %175 = arith.truncf %174 : vector<4x64xf32> to vector<4x64xbf16>
    %c0_71 = arith.constant 0 : index
    %c0_72 = arith.constant 0 : index
    %176 = vector.load %arg11[%c0_71, %c0_72] : memref<64x32xbf16, #tpu.memory_space<vmem>>, vector<64x32xbf16>
    %cst_73 = arith.constant dense<0.000000e+00> : vector<4x32xf32>
    %177 = tpu.matmul %175, %176, %cst_73 {dimension_numbers = #tpu.dot_dimension_numbers<[1], [0], [0], [1], [0, 0, 1, 1], [], []>} : vector<4x64xbf16>, vector<64x32xbf16>, vector<4x32xf32> -> vector<4x32xf32>
    %c0_74 = arith.constant 0 : index
    %c0_75 = arith.constant 0 : index
    %178 = vector.load %arg12[%c0_74, %c0_75] : memref<1x32xf32, #tpu.memory_space<vmem>>, vector<1x32xf32>
    %179 = vector.broadcast %178 : vector<1x32xf32> to vector<4x32xf32>
    %180 = arith.addf %177, %179 : vector<4x32xf32>
    %c0_76 = arith.constant 0 : index
    %c0_77 = arith.constant 0 : index
    %181 = vector.load %arg13[%c0_76, %c0_77] : memref<4x32xf32, #tpu.memory_space<vmem>>, vector<4x32xf32>
    tpu.vector_store %arg13[%c0_76, %c0_77], %180 {strides = array<i32>} : memref<4x32xf32, #tpu.memory_space<vmem>>, vector<4x32xf32>,
    return
  }
  func.func @transform_0(%arg0: i32) -> (i32, i32) {
    %c0_i32 = arith.constant 0 : i32
    %c0_i32_0 = arith.constant 0 : i32
    return %arg0, %c0_i32 : i32, i32
  }
  func.func @transform_1(%arg0: i32) -> (i32, i32, i32) {
    %c0_i32 = arith.constant 0 : i32
    %c0_i32_0 = arith.constant 0 : i32
    %c0_i32_1 = arith.constant 0 : i32
    return %c0_i32, %arg0, %c0_i32_0 : i32, i32, i32
  }
  func.func @transform_2(%arg0: i32) -> (i32, i32) {
    %c0_i32 = arith.constant 0 : i32
    %c0_i32_0 = arith.constant 0 : i32
    %c0_i32_1 = arith.constant 0 : i32
    return %c0_i32, %c0_i32_0 : i32, i32
  }
  func.func @transform_3(%arg0: i32) -> (i32, i32, i32) {
    %c0_i32 = arith.constant 0 : i32
    %c0_i32_0 = arith.constant 0 : i32
    %c0_i32_1 = arith.constant 0 : i32
    %c0_i32_2 = arith.constant 0 : i32
    return %c0_i32, %c0_i32_0, %c0_i32_1 : i32, i32, i32
  }
  func.func @transform_4(%arg0: i32) -> (i32, i32) {
    %c0_i32 = arith.constant 0 : i32
    %c0_i32_0 = arith.constant 0 : i32
    %c0_i32_1 = arith.constant 0 : i32
    return %c0_i32, %c0_i32_0 : i32, i32
  }
  func.func @transform_5(%arg0: i32) -> (i32, i32, i32) {
    %c0_i32 = arith.constant 0 : i32
    %c0_i32_0 = arith.constant 0 : i32
    %c0_i32_1 = arith.constant 0 : i32
    %c0_i32_2 = arith.constant 0 : i32
    return %c0_i32, %c0_i32_0, %c0_i32_1 : i32, i32, i32
  }
  func.func @transform_6(%arg0: i32) -> (i32, i32) {
    %c0_i32 = arith.constant 0 : i32
    %c0_i32_0 = arith.constant 0 : i32
    %c0_i32_1 = arith.constant 0 : i32
    return %c0_i32, %c0_i32_0 : i32, i32
  }
  func.func @transform_7(%arg0: i32) -> (i32, i32, i32) {
    %c0_i32 = arith.constant 0 : i32
    %c0_i32_0 = arith.constant 0 : i32
    %c0_i32_1 = arith.constant 0 : i32
    %c0_i32_2 = arith.constant 0 : i32
    return %c0_i32, %c0_i32_0, %c0_i32_1 : i32, i32, i32
  }
  func.func @transform_8(%arg0: i32) -> (i32, i32) {
    %c0_i32 = arith.constant 0 : i32
    %c0_i32_0 = arith.constant 0 : i32
    %c0_i32_1 = arith.constant 0 : i32
    return %c0_i32, %c0_i32_0 : i32, i32
  }
  func.func @transform_9(%arg0: i32) -> (i32, i32, i32) {
    %c0_i32 = arith.constant 0 : i32
    %c0_i32_0 = arith.constant 0 : i32
    %c0_i32_1 = arith.constant 0 : i32
    %c0_i32_2 = arith.constant 0 : i32
    return %c0_i32, %c0_i32_0, %c0_i32_1 : i32, i32, i32
  }
  func.func @transform_10(%arg0: i32) -> (i32, i32) {
    %c0_i32 = arith.constant 0 : i32
    %c0_i32_0 = arith.constant 0 : i32
    %c0_i32_1 = arith.constant 0 : i32
    return %c0_i32, %c0_i32_0 : i32, i32
  }
  func.func @transform_11(%arg0: i32) -> (i32, i32) {
    %c0_i32 = arith.constant 0 : i32
    %c0_i32_0 = arith.constant 0 : i32
    %c0_i32_1 = arith.constant 0 : i32
    return %c0_i32, %c0_i32_0 : i32, i32
  }
  func.func @transform_12(%arg0: i32) -> (i32, i32) {
    %c0_i32 = arith.constant 0 : i32
    %c0_i32_0 = arith.constant 0 : i32
    return %arg0, %c0_i32 : i32, i32
  }
  func.func @transform_13(%arg0: i32) -> (i32, i32, i32) {
    %c0_i32 = arith.constant 0 : i32
    %c0_i32_0 = arith.constant 0 : i32
    %c0_i32_1 = arith.constant 0 : i32
    return %c0_i32, %arg0, %c0_i32_0 : i32, i32, i32
  }
}

</mosaic_0001>

<bundles_post_ra>
// kernel: tpu_custom_call.1
= control target key start
LH: loop header
LB: loop body
LE: loop exit
PB: predicated region body
PF: predicated region fallthrough
CT: control target
= control target key end

     0   :  { %19 = vsyncpa [#allocation3], 0  ;;  %s1690_s0 = inlined_call_operand.hbm [shape: f32[4,32], index: 0, kind: input, shape index: {}]   ;;  %s1691_s1 = inlined_call_operand.hbm [shape: f32[4,4,32], index: 1, kind: input, shape index: {}]   ;;  %s1692_s2 = inlined_call_operand.hbm [shape: bf16[32,192], index: 2, kind: input, shape index: {}]   ;;  %s1693_s3 = inlined_call_operand.hbm [shape: bf16[2,32,96], index: 3, kind: input, shape index: {}]   ;;  %s1694_s4 = inlined_call_operand.vmem [shape: f32[1,192], index: 4, kind: input, shape index: {}]   ;;  %s1695_s5 = inlined_call_operand.hbm [shape: f32[2,1,96], index: 5, kind: input, shape index: {}]   ;;  %s1696_s6 = inlined_call_operand.vmem [shape: bf16[64,192], index: 6, kind: input, shape index: {}]   ;;  %s1697_s7 = inlined_call_operand.hbm [shape: bf16[2,32,96], index: 7, kind: input, shape index: {}]   ;;  %s1698_s8 = inlined_call_operand.hbm [shape: f32[1,192], index: 8, kind: input, shape index: {}]   ;;  %s1699_s9 = inlined_call_operand.hbm [shape: f32[2,1,96], index: 9, kind: input, shape index: {}]   ;;  %s1700_s10 = inlined_call_operand.vmem [shape: bf16[64,32], index: 10, kind: input, shape index: {}]   ;;  %s1701_s11 = inlined_call_operand.vmem [shape: f32[1,32], index: 11, kind: input, shape index: {}]   ;;  %s1702_s12 = inlined_call_operand.hbm [shape: f32[4,32], index: 12, kind: output, shape index: {0}]   ;;  %s1703_s13 = inlined_call_operand.hbm [shape: f32[4,4,32], index: 13, kind: output, shape index: {1}]  }
   0x1   :  { %20 = vsyncpa [#allocation6], 0 }
   0x2   :  { %21 = vsyncpa [#allocation9], 0 }
   0x3   :  { %22 = vsyncpa [#allocation12], 0 }
   0x4   :  { %23 = vsyncpa [#allocation15], 0 }
   0x5   :  { %24 = vsyncpa [#allocation4], 0 }
   0x6   :  { %25 = vsyncpa [#allocation18], 0  ;;  %s1316_s25 = smov [#allocation5]   ;;  %s1082_s29 = scalar_lea.hbm %s1691_s1, 256 }
   0x7   :  { %s41_s26 = sshll.u32 %s1316_s25, 4  ;;  %p1083_p0 = scmp.ne.s32.totalorder %s1691_s1, %s1082_s29  ;;  %s42_s26 = int_to_ptr.vmem [resolvable:$true] %s41_s26 }
   0x8   :  { %p1086_p1 = scmp.lt.u32.totalorder %s1082_s29, %s1691_s1 }
   0xa   :  { %p1088_p2 = pnand %p1086_p1, %p1083_p0 }
   0xc   :  { %1091 = shalt.err (!%p1088_p2)
}
   0xd   :  { %s1092_s17 = scalar_lea.vmem %s42_s26, 256  ;;  %p1097_p4 = scmp.lt.s32.totalorder %s42_s26, %s42_s26 }
   0xe   :  { %p1093_p3 = scmp.ne.s32.totalorder %s42_s26, %s1092_s17  ;;  %p1098_p5 = scmp.lt.s32.totalorder %s1092_s17, %s1092_s17 }
  0x10   :  { %p1099_p6 = por %p1098_p5, %p1097_p4 }
  0x12   :  { %p1100_p7 = pnand %p1099_p6, %p1093_p3 }
  0x14   :  { %1103 = shalt.err (!%p1100_p7)
}
  0x15   :  { %s1317_s18 = smov 64   ;;  %s1318_s19 = smov 4  }
  0x16   :  { %47 = dma.hbm_to_vmem [thread:$0]  %s1691_s1, 256, %s42_s26, [#allocation6], %s1317_s18, %s1317_s18, %s1318_s19  }
  0x17   :  { %s1319_s22 = smov [#allocation8]   ;;  %s1320_s24 = smov [#allocation11]  }
  0x18   :  { %s65_s23 = sshll.u32 %s1319_s22, 4  ;;  %s93_s25 = sshll.u32 %s1320_s24, 4  ;;  %s66_s23 = int_to_ptr.vmem [resolvable:$true] %s65_s23  ;;  %s94_s25 = int_to_ptr.vmem [resolvable:$true] %s93_s25 }
  0x19   :  { %s1104_s29 = scalar_lea.hbm %s1693_s3, 512 }
  0x1a   :  { %p1105_p8 = scmp.ne.s32.totalorder %s1693_s3, %s1104_s29  ;;  %p1108_p9 = scmp.lt.u32.totalorder %s1104_s29, %s1693_s3 }
  0x1c   :  { %p1110_p10 = pnand %p1108_p9, %p1105_p8 }
  0x1e   :  { %1113 = shalt.err (!%p1110_p10)
}
  0x1f   :  { %s1114_s1 = scalar_lea.vmem %s66_s23, 512  ;;  %p1119_p12 = scmp.lt.s32.totalorder %s66_s23, %s66_s23 }
  0x20   :  { %p1115_p11 = scmp.ne.s32.totalorder %s66_s23, %s1114_s1  ;;  %p1120_p13 = scmp.lt.s32.totalorder %s1114_s1, %s1114_s1 }
  0x22   :  { %p1121_p0 = por %p1120_p13, %p1119_p12 }
  0x24   :  { %p1122_p1 = pnand %p1121_p0, %p1115_p11 }
  0x26   :  { %1125 = shalt.err (!%p1122_p1)
}
  0x27   :  { %71 = dma.hbm_to_vmem [thread:$0]  %s1693_s3, 512, %s66_s23, [#allocation9], %s1317_s18, %s1317_s18, %s1318_s19  }
  0x28   :  { %s1126_s22 = scalar_lea.hbm %s1697_s7, 512 }
  0x29   :  { %p1127_p2 = scmp.ne.s32.totalorder %s1697_s7, %s1126_s22  ;;  %p1130_p3 = scmp.lt.u32.totalorder %s1126_s22, %s1697_s7 }
  0x2b   :  { %p1132_p4 = pnand %p1130_p3, %p1127_p2 }
  0x2d   :  { %1135 = shalt.err (!%p1132_p4)
}
  0x2e   :  { %s1136_s30 = scalar_lea.vmem %s94_s25, 512  ;;  %p1141_p6 = scmp.lt.s32.totalorder %s94_s25, %s94_s25 }
  0x2f   :  { %p1137_p5 = scmp.ne.s32.totalorder %s94_s25, %s1136_s30  ;;  %p1142_p7 = scmp.lt.s32.totalorder %s1136_s30, %s1136_s30 }
  0x31   :  { %p1143_p8 = por %p1142_p7, %p1141_p6 }
  0x33   :  { %p1144_p9 = pnand %p1143_p8, %p1137_p5 }
  0x35   :  { %1147 = shalt.err (!%p1144_p9)
}
  0x36   :  { %99 = dma.hbm_to_vmem [thread:$0]  %s1697_s7, 512, %s94_s25, [#allocation12], %s1317_s18, %s1317_s18, %s1318_s19  }
  0x37   :  { %s1321_s14 = smov [#allocation2]   ;;  %s1322_s16 = smov [#allocation7]  }
  0x38   :  { %s32_s15 = sshll.u32 %s1321_s14, 4  ;;  %s53_s1 = sshll.u32 %s1322_s16, 4  ;;  %s33_s15 = int_to_ptr.vmem [resolvable:$true] %s32_s15  ;;  %s54_s1 = int_to_ptr.vmem [resolvable:$true] %s53_s1 }
  0x39   :  { %s1148_s20 = scalar_lea.hbm %s1690_s0, 64 }
  0x3a   :  { %p1149_p10 = scmp.ne.s32.totalorder %s1690_s0, %s1148_s20  ;;  %p1152_p11 = scmp.lt.u32.totalorder %s1148_s20, %s1690_s0 }
  0x3c   :  { %p1154_p12 = pnand %p1152_p11, %p1149_p10 }
  0x3e   :  { %1157 = shalt.err (!%p1154_p12)
}
  0x3f   :  { %s1158_s7 = scalar_lea.vmem %s33_s15, 64  ;;  %p1163_p0 = scmp.lt.s32.totalorder %s33_s15, %s33_s15 }
  0x40   :  { %p1159_p13 = scmp.ne.s32.totalorder %s33_s15, %s1158_s7  ;;  %p1164_p1 = scmp.lt.s32.totalorder %s1158_s7, %s1158_s7 }
  0x42   :  { %p1165_p2 = por %p1164_p1, %p1163_p0 }
  0x44   :  { %p1166_p3 = pnand %p1165_p2, %p1159_p13 }
  0x46   :  { %1169 = shalt.err (!%p1166_p3)
}
  0x47   :  { %35 = dma.hbm_to_vmem [thread:$0]  %s1690_s0, 64, %s33_s15, [#allocation3]  }
  0x48   :  { %s1170_s3 = scalar_lea.hbm %s1692_s2, 512 }
  0x49   :  { %p1171_p4 = scmp.ne.s32.totalorder %s1692_s2, %s1170_s3  ;;  %p1174_p5 = scmp.lt.u32.totalorder %s1170_s3, %s1692_s2 }
  0x4b   :  { %p1176_p6 = pnand %p1174_p5, %p1171_p4 }
  0x4d   :  { %1179 = shalt.err (!%p1176_p6)
}
  0x4e   :  { %s1180_s17 = scalar_lea.vmem %s54_s1, 512  ;;  %p1185_p8 = scmp.lt.s32.totalorder %s54_s1, %s54_s1 }
  0x4f   :  { %p1181_p7 = scmp.ne.s32.totalorder %s54_s1, %s1180_s17  ;;  %p1186_p9 = scmp.lt.s32.totalorder %s1180_s17, %s1180_s17 }
  0x51   :  { %p1187_p10 = por %p1186_p9, %p1185_p8 }
  0x53   :  { %p1188_p11 = pnand %p1187_p10, %p1181_p7 }
  0x55   :  { %1191 = shalt.err (!%p1188_p11)
}
  0x56   :  { %s1323_s0 = smov 128   ;;  %s1324_s15 = smov 8  }
  0x57   :  { %59 = dma.hbm_to_vmem [thread:$0]  %s1692_s2, 512, %s54_s1, [#allocation6], %s1323_s0, %s1323_s0, %s1324_s15  }
  0x58   :  { %s1325_s22 = smov [#allocation10]   ;;  %s1192_s25 = scalar_lea.hbm %s1695_s5, 32 }
  0x59   :  { %s79_s24 = sshll.u32 %s1325_s22, 4  ;;  %p1193_p12 = scmp.ne.s32.totalorder %s1695_s5, %s1192_s25  ;;  %s80_s24 = int_to_ptr.vmem [resolvable:$true] %s79_s24 }
  0x5a   :  { %p1196_p13 = scmp.lt.u32.totalorder %s1192_s25, %s1695_s5 }
  0x5c   :  { %p1198_p0 = pnand %p1196_p13, %p1193_p12 }
  0x5e   :  { %1201 = shalt.err (!%p1198_p0)
}
  0x5f   :  { %s1202_s23 = scalar_lea.vmem %s80_s24, 32  ;;  %p1207_p2 = scmp.lt.s32.totalorder %s80_s24, %s80_s24 }
  0x60   :  { %p1203_p1 = scmp.ne.s32.totalorder %s80_s24, %s1202_s23  ;;  %p1208_p3 = scmp.lt.s32.totalorder %s1202_s23, %s1202_s23 }
  0x62   :  { %p1209_p4 = por %p1208_p3, %p1207_p2 }
  0x64   :  { %p1210_p5 = pnand %p1209_p4, %p1203_p1 }
  0x66   :  { %1213 = shalt.err (!%p1210_p5)
}
  0x67   :  { %s1326_s2 = smov 16   ;;  %s1327_s1 = smov 1  }
  0x68   :  { %85 = dma.hbm_to_vmem [thread:$0]  %s1695_s5, 32, %s80_s24, [#allocation9], %s1326_s2, %s1326_s2, %s1327_s1  }
  0x69   :  { %s1328_s26 = smov [#allocation13]   ;;  %s1329_s0 = smov [#allocation14]  }
  0x6a   :  { %s106_s17 = sshll.u32 %s1328_s26, 4  ;;  %s115_s15 = sshll.u32 %s1329_s0, 4  ;;  %s107_s17 = int_to_ptr.vmem [resolvable:$true] %s106_s17  ;;  %s1491_s15 = int_to_ptr.vmem [resolvable:$true] %s115_s15 }
  0x6b   :  { %s1214_s22 = scalar_lea.hbm %s1698_s8, 32 }
  0x6c   :  { %p1215_p6 = scmp.ne.s32.totalorder %s1698_s8, %s1214_s22  ;;  %p1218_p7 = scmp.lt.u32.totalorder %s1214_s22, %s1698_s8 }
  0x6e   :  { %p1220_p8 = pnand %p1218_p7, %p1215_p6 }
  0x70   :  { %1223 = shalt.err (!%p1220_p8)
}
  0x71   :  { %s1224_s5 = scalar_lea.vmem %s107_s17, 32  ;;  %p1229_p10 = scmp.lt.s32.totalorder %s107_s17, %s107_s17 }
  0x72   :  { %p1225_p9 = scmp.ne.s32.totalorder %s107_s17, %s1224_s5  ;;  %p1230_p11 = scmp.lt.s32.totalorder %s1224_s5, %s1224_s5 }
  0x74   :  { %p1231_p12 = por %p1230_p11, %p1229_p10 }
  0x76   :  { %p1232_p13 = pnand %p1231_p12, %p1225_p9 }
  0x78   :  { %1235 = shalt.err (!%p1232_p13)
}
  0x79   :  { %109 = dma.hbm_to_vmem [thread:$0]  %s1698_s8, 32, %s107_s17, [#allocation12]  }
  0x7a   :  { %s1236_s23 = scalar_lea.hbm %s1699_s9, 32 }
  0x7b   :  { %p1237_p0 = scmp.ne.s32.totalorder %s1699_s9, %s1236_s23  ;;  %p1240_p1 = scmp.lt.u32.totalorder %s1236_s23, %s1699_s9 }
  0x7d   :  { %p1242_p2 = pnand %p1240_p1, %p1237_p0 }
  0x7f   :  { %1245 = shalt.err (!%p1242_p2)
}
  0x80   :  { %s1246_s20 = scalar_lea.vmem %s1491_s15, 32  ;;  %p1251_p4 = scmp.lt.s32.totalorder %s1491_s15, %s1491_s15 }
  0x81   :  { %p1247_p3 = scmp.ne.s32.totalorder %s1491_s15, %s1246_s20  ;;  %p1252_p5 = scmp.lt.s32.totalorder %s1246_s20, %s1246_s20 }
  0x83   :  { %p1253_p6 = por %p1252_p5, %p1251_p4 }
  0x85   :  { %p1254_p7 = pnand %p1253_p6, %p1247_p3 }
  0x87   :  { %1257 = shalt.err (!%p1254_p7)
}
  0x88   :  { %121 = dma.hbm_to_vmem [thread:$0]  %s1699_s9, 32, %s1491_s15, [#allocation15], %s1326_s2, %s1326_s2, %s1327_s1  }
  0x89   :  { %1302 = dma.done.wait [#allocation3], 64  }
  0x8a   :  { %1303 = vsyncadd [#allocation3], 4294967232 }
  0x8b   :  { %1304 = dma.done.wait [#allocation6], 768  }
  0x8c   :  { %1305 = vsyncadd [#allocation6], 4294966528 }
  0x8d   :  { %1306 = dma.done.wait [#allocation9], 544  }
  0x8e   :  { %1307 = vsyncadd [#allocation9], 4294966752 }
  0x8f   :  { %1308 = dma.done.wait [#allocation12], 544  }
  0x90   :  { %1309 = vsyncadd [#allocation12], 4294966752 }
  0x91   :  { %1310 = dma.done.wait [#allocation15], 32  }
  0x92   :  { %1311 = vsyncadd [#allocation15], 4294967264  ;;  %v1330_v0 = vmov 0.0   ;;  %v1331_v1 = vmov 0   ;;  %vm1332_vm0 = vmmov 0   ;;  %v1023_v4 = vld [vmem:[#allocation8] sm:$0xff]   ;;  %v159_v32 = vlaneseq }
  0x93   :  { %955 = vmatprep.subr.bf16.mxu1 %v1330_v0  ;;  %225 = vmatprep.mubr.bf16.mxu0 %v1331_v1  ;;  %v1020_v2 = vld [vmem:[#allocation7 + $0x4] ss:$8 sps:$4 sm:$0xff]   ;;  %v1022_v3 = vld [vmem:[#allocation7] ss:$8 sps:$4 sm:$0xff]   ;;  %v1024_v5 = vld [vmem:[#allocation7 + $0x14] ss:$8 sps:$4 sm:$0xff]  }
  0x94   :  { %959 = vmatprep.mubr.msk.bf16.mxu1 %vm1332_vm0, %v1330_v0  ;;  %193 = vmatprep.subr.bf16.mxu0 %v1020_v2  ;;  %v1026_v6 = vld [vmem:[#allocation7 + $0x10] ss:$8 sps:$4 sm:$0xff]   ;;  %v1027_v7 = vld [vmem:[#allocation8 + $0x8] sm:$0xff]   ;;  %vm189_vm1 = vcmask 261120   ;;  %v1534_v14 = vld [vmem:[#allocation5 + $0x4] sm:$0xf] }
  0x95   :  { %194 = vmatpush1.bf16.msra.mxu0 %v1022_v3  ;;  %956 = vmatpush3.bf16.msra.mxu1 %v1023_v4  ;;  %v151_v8 = vld [vmem:[#allocation2] sm:$0xf]  ;;  %v1529_v9 = vld [vmem:[#allocation5] sm:$0xf]  ;;  %v1029_v13 = vld [vmem:[#allocation8 + $0x18] sm:$0xff]   ;;  %v340_v15 = vpack.c.bf16 %v1534_v14, %v1534_v14  ;;  %s1333_s9 = smov 96  }
  0x96   :  { %195 = vmatprep.subr.bf16.mxu0 %v1024_v5  ;;  %957 = vmatprep.subr.bf16.mxu1 %v1330_v0  ;;  %v152_v10 = vpack.c.bf16 %v151_v8, %v151_v8  ;;  %v235_v11 = vpack.c.bf16 %v1529_v9, %v1529_v9  ;;  %v1028_v12 = vld [vmem:[#allocation8 + $0x10] sm:$0xff]   ;;  %v906_v24 = vld [vmem:[#allocation10 + $0x1] ss:$0 sm:$0xff]  ;;  %v901_v28 = vld [vmem:[#allocation10] ss:$0 sm:$0xff]  ;;  %s1334_s2 = smov 32  }
  0x97   :  { %v1552_v33 = vshrl.u32 %v159_v32, 7  ;;  %v157_v35 = vld [vmem:[%s1694_s4] sm:$0x3]  ;;  %v1030_v55 = vld [vmem:[#allocation11] sm:$0xff]   ;;  %v1567_v57 = vld [vmem:[#allocation5 + $0x8] sm:$0xf] }
  0x98   :  { %v1031_v56 = vld [vmem:[#allocation11 + $0x8] sm:$0xff]   ;;  %v560_v58 = vpack.c.bf16 %v1567_v57, %v1567_v57  ;;  %v1033_v3 = vld [vmem:[#allocation11 + $0x18] sm:$0xff]   ;;  %vm336_vm2 = vcmask 257024   ;;  %v921_v32 = vld [vmem:[#allocation14] ss:$0 sm:$0xff]  ;;  %vm513_vm3 = vcmask 523264  }
  0x99   :  { %196 = vmatpush1.bf16.msra.mxu0 %v1026_v6  ;;  %958 = vmatpush3.bf16.msra.mxu1 %v1027_v7  ;;  %v161_v34 = vsub.s32 0, %v1552_v33  ;;  %v165_v60 = vsub.s32 1, %v1552_v33  ;;  %v1582_v4 = vld [vmem:[#allocation5 + $0xc] sm:$0xf] }
  0x9a   :  { %963 = vmatprep.subr.bf16.mxu0 %v1330_v0  ;;  %v665_v5 = vpack.c.bf16 %v1582_v4, %v1582_v4 }
  0x9b   :  { %v162_v36 = vrot.slane %v157_v35, %v161_v34  ;;  %v166_v61 = vrot.slane %v157_v35, %v165_v60 }
  0x9c   :  { %900 = vmatmul.mubr.msk.bf16.vlgmr.msra.gmra.mrb[0].mxu0 %vm189_vm1, %v152_v10  ;;  %960 = vmatmul.mubr.msk.bf16.vlgmr.msra.gmra.mrb[0].mxu1 %vm189_vm1, %v235_v11  ;;  %v1036_v10 = vld [vmem:[%s1696_s6 + $0x4] ss:$8 sps:$4 sm:$0xff]   ;;  %v1039_v11 = vld [vmem:[%s1696_s6 + $0x14] ss:$8 sps:$4 sm:$0xff]  }
  0x9d   :  { %964 = vmatpush3.bf16.msra.mxu0 %v1028_v12  ;;  %967 = vmatprep.mubr.msk.bf16.mxu0 %vm1332_vm0, %v1330_v0  ;;  %v1037_v12 = vld [vmem:[%s1696_s6 + $0x10] ss:$8 sps:$4 sm:$0xff]  }
  0x9e   :  { %965 = vmatprep.subr.bf16.mxu0 %v1330_v0  ;;  %549 = vmatprep.mubr.bf16.mxu1 %v1331_v1  ;;  %v1032_v1 = vld [vmem:[#allocation11 + $0x10] sm:$0xff]  }
  0x9f   :  { %517 = vmatprep.subr.bf16.mxu1 %v1036_v10 }
  0xa1   :  { %966 = vmatpush3.bf16.msra.mxu0 %v1029_v13  ;;  %v1042_v13 = vld [vmem:[%s1696_s6 + $0x24] ss:$8 sps:$4 sm:$0xff]  }
  0xa2   :  { %971 = vmatprep.subr.bf16.mxu0 %v1330_v0 }
  0xa4   :  { %968 = vmatmul.mubr.msk.bf16.vlgmr.msra.gmra.mrb[4].mxu0 %vm189_vm1, %v340_v15 }
  0xa5   :  { %975 = vmatprep.mubr.msk.bf16.mxu0 %vm1332_vm0, %v1330_v0  ;;  %972 = vmatpush3.bf16.msra.mxu0 %v1030_v55 }
  0xa6   :  { %973 = vmatprep.subr.bf16.mxu0 %v1330_v0 }
  0xa9   :  { %974 = vmatpush3.bf16.msra.mxu0 %v1031_v56 }
  0xaa   :  { %979 = vmatprep.subr.bf16.mxu0 %v1330_v0 }
  0xac   :  { %976 = vmatmul.mubr.msk.bf16.vlgmr.msra.gmra.mrb[8].mxu0 %vm189_vm1, %v560_v58 }
  0xad   :  { %983 = vmatprep.mubr.msk.bf16.mxu0 %vm1332_vm0, %v1330_v0  ;;  %980 = vmatpush3.bf16.msra.mxu0 %v1032_v1 }
  0xae   :  { %981 = vmatprep.subr.bf16.mxu0 %v1330_v0 }
  0xb1   :  { %982 = vmatpush3.bf16.msra.mxu0 %v1033_v3 }
  0xb4   :  { %984 = vmatmul.mubr.msk.bf16.vlgmr.msra.gmra.mrb[12].mxu0 %vm189_vm1, %v665_v5 }
 0x16f   :  { %v227_v16 = vpop.f32.mrb[0].mxu0  ;;  %v296_v18 = vpop.f32.mrb[0].mxu1 }
 0x170   :  { %v1547_v17 = vpop.f32.mrb[1].mxu0  ;;  %v961_v20 = vpop.f32.mrb[1].mxu1  ;;  %v297_v31 = vadd.f32 %v901_v28, %v296_v18  ;;  %v228_v37 = vadd.f32 %v227_v16, %v162_v36 }
 0x171   :  { %v231_v19 = vpop.f32.mrb[2].mxu0  ;;  %v299_v22 = vpop.f32.mrb[2].mxu1  ;;  %v230_v62 = vadd.f32 %v1547_v17, %v166_v61  ;;  %v1040_v17 = vld [vmem:[%s1696_s6 + $0x20] ss:$8 sps:$4 sm:$0xff]  }
 0x172   :  { %v232_v21 = vpop.f32.mrb[3].mxu0  ;;  %v962_v23 = vpop.f32.mrb[3].mxu1  ;;  %v302_v38 = vadd.f32 %v297_v31, %v228_v37  ;;  %v1045_v19 = vld [vmem:[%s1696_s6 + $0x34] ss:$8 sps:$4 sm:$0xff]  }
 0x174   :  { %v905_v39 = vmul.f32 -1.442695, %v302_v38 }
 0x176   :  { %1050 = vpow2.f32 %v905_v39 }
 0x177   :  { %v403_v25 = vpop.f32.mrb[4].mxu0 }
 0x178   :  { %v404_v26 = vadd.f32 %v906_v24, %v403_v25  ;;  %v969_v27 = vpop.f32.mrb[5].mxu0  ;;  %v1043_v24 = vld [vmem:[%s1696_s6 + $0x30] ss:$8 sps:$4 sm:$0xff]  }
 0x179   :  { %v406_v29 = vpop.f32.mrb[6].mxu0 }
 0x17a   :  { %410 = vrot.lane.b32.xlu0 %v404_v26, %s1333_s9  ;;  %v970_v30 = vpop.f32.mrb[7].mxu0  ;;  %420 = vrot.lane.b32.xlu1 %v404_v26, %s1334_s2 }
 0x17e   :  { %310 = vrot.lane.b32.xlu0 %v297_v31, %s1317_s18 }
 0x17f   :  { %v621_v35 = vpop.f32.mrb[8].mxu0 }
 0x180   :  { %v1051_v40 = vpop.eup %1050  ;;  %v622_v36 = vadd.f32 %v921_v32, %v621_v35 }
 0x181   :  { %v306_v41 = vadd.f32 1.0, %v1051_v40  ;;  %v926_v40 = vld [vmem:[#allocation14 + $0x1] ss:$0 sm:$0xff] }
 0x183   :  { %1052 = vrcp.f32 %v306_v41 }
 0x18d   :  { %v1560_v45 = vpop.eup %1052 }
 0x18e   :  { %v320_v16 = vsub.f32 1.0, %v1560_v45 }
 0x1ec   :  { %v411_v42 = vpop.permute.xlu0 %410  ;;  %v421_v51 = vpop.permute.xlu1 %420 }
 0x1ed   :  { %v413_v43 = vadd.f32 %v411_v42, %v228_v37  ;;  %v430_v7 = vadd.f32 %v411_v42, %v230_v62 }
 0x1ef   :  { %v910_v44 = vmul.f32 -1.442695, %v413_v43  ;;  %v911_v8 = vmul.f32 -1.442695, %v430_v7 }
 0x1f0   :  { %v311_v46 = vpop.permute.xlu0 %310 }
 0x1f1   :  { %1054 = vpow2.f32 %v910_v44  ;;  %v313_v47 = vmul.f32 %v1560_v45, %v311_v46 }
 0x1f3   :  { %315 = vrot.lane.b32.xlu1 %v313_v47, %s1317_s18 }
 0x1fb   :  { %v1055_v48 = vpop.eup %1054 }
 0x1fc   :  { %v417_v49 = vadd.f32 1.0, %v1055_v48 }
 0x1fe   :  { %1056 = vrcp.f32 %v417_v49  ;;  %v461_v49 = vld [vmem:[#allocation13] sm:$0x3] }
 0x1ff   :  { %v470_v10 = vrot.slane %v461_v49, %v165_v60 }
 0x208   :  { %v1057_v50 = vpop.eup %1056 }
 0x209   :  { %v423_v52 = vmul.f32 %v1057_v50, %v421_v51  ;;  %v466_v50 = vrot.slane %v461_v49, %v161_v34 }
 0x20b   :  { %425 = vrot.lane.b32.xlu0 %v423_v52, %s1317_s18 }
 0x20f   :  { %327 = vrot.lane.b32.xlu0 %v1529_v9, %s1334_s2  ;;  %v1034_v9 = vld [vmem:[%s1696_s6] ss:$8 sps:$4 sm:$0xff]  }
 0x210   :  { %518 = vmatpush1.bf16.msra.mxu1 %v1034_v9 }
 0x211   :  { %519 = vmatprep.subr.bf16.mxu1 %v1039_v11 }
 0x214   :  { %520 = vmatpush1.bf16.msra.mxu1 %v1037_v12 }
 0x215   :  { %521 = vmatprep.subr.bf16.mxu1 %v1042_v13 }
 0x218   :  { %522 = vmatpush1.bf16.msra.mxu1 %v1040_v17  ;;  %v1046_v17 = vld [vmem:[%s1700_s10] sm:$0xff]  }
 0x219   :  { %523 = vmatprep.subr.bf16.mxu1 %v1045_v19 }
 0x21c   :  { %524 = vmatpush1.bf16.msra.mxu1 %v1043_v24 }
 0x21d   :  { %987 = vmatprep.subr.bf16.mxu1 %v1330_v0 }
 0x265   :  { %v316_v53 = vpop.permute.xlu1 %315 }
 0x266   :  { %v318_v54 = vadd.f32 %v316_v53, %v228_v37  ;;  %v977_v37 = vpop.f32.mrb[9].mxu0 }
 0x267   :  { %v624_v38 = vpop.f32.mrb[10].mxu0 }
 0x268   :  { %1058 = vtanh.f32 %v318_v54  ;;  %v978_v39 = vpop.f32.mrb[11].mxu0 }
 0x269   :  { %v728_v41 = vpop.f32.mrb[12].mxu0 }
 0x26a   :  { %v729_v42 = vadd.f32 %v926_v40, %v728_v41  ;;  %v985_v43 = vpop.f32.mrb[13].mxu0 }
 0x272   :  { %v1059_v59 = vpop.eup %1058 }
 0x273   :  { %322 = vrot.lane.b32.xlu1 %v1059_v59, %s1333_s9 }
 0x27d   :  { %v426_v63 = vpop.permute.xlu0 %425 }
 0x27e   :  { %v428_v2 = vadd.f32 %v426_v63, %v230_v62 }
 0x280   :  { %1060 = vtanh.f32 %v428_v2 }
 0x281   :  { %1062 = vpow2.f32 %v911_v8  ;;  %v328_v15 = vpop.permute.xlu0 %327 }
 0x282   :  { %v330_v20 = vmul.f32 %v1560_v45, %v328_v15 }
 0x28a   :  { %v1061_v6 = vpop.eup %1060 }
 0x28b   :  { %439 = vrot.lane.b32.xlu1 %v1061_v6, %s1333_s9  ;;  %v1063_v22 = vpop.eup %1062 }
 0x28c   :  { %v434_v25 = vadd.f32 1.0, %v1063_v22  ;;  %v1048_v22 = vld [vmem:[%s1700_s10 + $0x10] sm:$0xff]  }
 0x28e   :  { %1064 = vrcp.f32 %v434_v25 }
 0x298   :  { %v1065_v26 = vpop.eup %1064 }
 0x299   :  { %v437_v27 = vsub.f32 1.0, %v1065_v26  ;;  %v443_v29 = vmul.f32 %v1065_v26, %v1534_v14  ;;  %v731_v14 = vpop.f32.mrb[14].mxu0 }
 0x29a   :  { %v986_v45 = vpop.f32.mrb[15].mxu0 }
 0x2e5   :  { %v323_v18 = vpop.permute.xlu1 %322 }
 0x2e6   :  { %v325_v21 = vmul.f32 %v323_v18, %v320_v16  ;;  %v1047_v18 = vld [vmem:[%s1700_s10 + $0x8] sm:$0xff]  }
 0x2e8   :  { %v331_v23 = vadd.f32 %v330_v20, %v325_v21 }
 0x2ea   :  { %333 = vrot.lane.b32.xlu0 %v331_v23, %s1333_s9  ;;  %v1049_v23 = vld [vmem:[%s1700_s10 + $0x18] sm:$0xff]   ;;  %s1335_s10 = smov [#allocation17]  }
 0x2eb   :  { %s876_s21 = sshll.u32 %s1335_s10, 4  ;;  %s877_s21 = int_to_ptr.vmem [resolvable:$true] %s876_s21 }
 0x2ec   :  { %s1258_s22 = scalar_lea.vmem %s877_s21, 256  ;;  %p1263_p9 = scmp.lt.s32.totalorder %s877_s21, %s877_s21 }
 0x2ed   :  { %p1259_p8 = scmp.ne.s32.totalorder %s877_s21, %s1258_s22  ;;  %p1264_p10 = scmp.lt.s32.totalorder %s1258_s22, %s1258_s22 }
 0x2ee   :  { %735 = vrot.lane.b32.xlu0 %v729_v42, %s1333_s9 }
 0x2ef   :  { %p1265_p11 = por %p1264_p10, %p1263_p9 }
 0x2f1   :  { %p1266_p12 = pnand %p1265_p11, %p1259_p8 }
 0x2f2   :  { %745 = vrot.lane.b32.xlu0 %v729_v42, %s1334_s2 }
 0x2fd   :  { %v440_v28 = vpop.permute.xlu1 %439 }
 0x2fe   :  { %v442_v30 = vmul.f32 %v440_v28, %v437_v27 }
 0x300   :  { %v444_v31 = vadd.f32 %v443_v29, %v442_v30 }
 0x302   :  { %446 = vst.msk [vmem:[#allocation17 + $0x4] sm:$0xf] %vm336_vm2, %v444_v31  ;;  %448 = vrot.lane.b32.xlu1 %v444_v31, %s1334_s2 }
 0x306   :  { %635 = vrot.lane.b32.xlu1 %v622_v36, %s1317_s18 }
 0x35c   :  { %v334_v44 = vpop.permute.xlu0 %333 }
 0x35d   :  { %337 = vst.msk [vmem:[#allocation17] sm:$0xf] %vm336_vm2, %v334_v44 }
 0x360   :  { %v736_v52 = vpop.permute.xlu0 %735 }
 0x364   :  { %v746_v7 = vpop.permute.xlu0 %745 }
 0x374   :  { %v449_v46 = vpop.permute.xlu1 %448 }
 0x375   :  { %v451_v47 = vsel %vm189_vm1, %v334_v44, %v449_v46 }
 0x376   :  { %v452_v48 = vpack.c.bf16 %v451_v47, %v451_v47 }
 0x378   :  { %920 = vmatmul.mubr.msk.bf16.vlgmr.msra.gmra.mrb[4].mxu1 %vm513_vm3, %v452_v48  ;;  %v636_v34 = vpop.permute.xlu1 %635 }
 0x379   :  { %995 = vmatprep.mubr.msk.bf16.mxu1 %vm1332_vm0, %v1330_v0  ;;  %988 = vmatpush3.bf16.msra.mxu1 %v1046_v17 }
 0x37a   :  { %989 = vmatprep.subr.bf16.mxu1 %v1330_v0 }
 0x37d   :  { %990 = vmatpush3.bf16.msra.mxu1 %v1047_v18 }
 0x37e   :  { %991 = vmatprep.subr.bf16.mxu1 %v1330_v0 }
 0x381   :  { %992 = vmatpush3.bf16.msra.mxu1 %v1048_v22 }
 0x382   :  { %993 = vmatprep.subr.bf16.mxu1 %v1330_v0 }
 0x385   :  { %994 = vmatpush3.bf16.msra.mxu1 %v1049_v23 }
 0x44b   :  { %v551_v51 = vpop.f32.mrb[4].mxu1 }
 0x44c   :  { %v552_v53 = vadd.f32 %v551_v51, %v466_v50  ;;  %v553_v54 = vpop.f32.mrb[5].mxu1 }
 0x44d   :  { %v555_v55 = vpop.f32.mrb[6].mxu1  ;;  %v554_v12 = vadd.f32 %v553_v54, %v470_v10 }
 0x44e   :  { %v627_v56 = vadd.f32 %v622_v36, %v552_v53  ;;  %v738_v58 = vadd.f32 %v736_v52, %v552_v53  ;;  %v556_v59 = vpop.f32.mrb[7].mxu1 }
 0x44f   :  { %v755_v60 = vadd.f32 %v736_v52, %v554_v12 }
 0x450   :  { %v925_v61 = vmul.f32 -1.442695, %v627_v56  ;;  %v930_v62 = vmul.f32 -1.442695, %v738_v58 }
 0x451   :  { %v931_v19 = vmul.f32 -1.442695, %v755_v60 }
 0x452   :  { %1066 = vpow2.f32 %v925_v61 }
 0x453   :  { %1068 = vpow2.f32 %v930_v62 }
 0x45c   :  { %v1067_v63 = vpop.eup %1066 }
 0x45d   :  { %v1069_v1 = vpop.eup %1068  ;;  %v631_v2 = vadd.f32 1.0, %v1067_v63 }
 0x45e   :  { %v742_v3 = vadd.f32 1.0, %v1069_v1 }
 0x45f   :  { %1070 = vrcp.f32 %v631_v2 }
 0x460   :  { %1072 = vrcp.f32 %v742_v3 }
 0x469   :  { %v1071_v5 = vpop.eup %1070 }
 0x46a   :  { %v1073_v6 = vpop.eup %1072  ;;  %v638_v8 = vmul.f32 %v1071_v5, %v636_v34  ;;  %v645_v25 = vsub.f32 1.0, %v1071_v5 }
 0x46b   :  { %v748_v9 = vmul.f32 %v1073_v6, %v746_v7 }
 0x46c   :  { %640 = vrot.lane.b32.xlu1 %v638_v8, %s1317_s18 }
 0x46d   :  { %750 = vrot.lane.b32.xlu0 %v748_v9, %s1317_s18 }
 0x471   :  { %652 = vrot.lane.b32.xlu0 %v1567_v57, %s1334_s2 }
 0x4de   :  { %v641_v11 = vpop.permute.xlu1 %640 }
 0x4df   :  { %v751_v13 = vpop.permute.xlu0 %750  ;;  %v643_v15 = vadd.f32 %v641_v11, %v552_v53 }
 0x4e0   :  { %v753_v16 = vadd.f32 %v751_v13, %v554_v12 }
 0x4e1   :  { %1074 = vtanh.f32 %v643_v15 }
 0x4e2   :  { %1076 = vtanh.f32 %v753_v16 }
 0x4e3   :  { %1078 = vpow2.f32 %v931_v19  ;;  %v653_v24 = vpop.permute.xlu0 %652 }
 0x4e4   :  { %v655_v28 = vmul.f32 %v1071_v5, %v653_v24 }
 0x4eb   :  { %v1075_v33 = vpop.eup %1074 }
 0x4ec   :  { %647 = vrot.lane.b32.xlu1 %v1075_v33, %s1333_s9  ;;  %v1077_v57 = vpop.eup %1076 }
 0x4ed   :  { %v1079_v20 = vpop.eup %1078 }
 0x4ee   :  { %v759_v21 = vadd.f32 1.0, %v1079_v20 }
 0x4f0   :  { %764 = vrot.lane.b32.xlu1 %v1077_v57, %s1333_s9  ;;  %1080 = vrcp.f32 %v759_v21 }
 0x4fa   :  { %v1081_v26 = vpop.eup %1080 }
 0x4fb   :  { %v762_v31 = vsub.f32 1.0, %v1081_v26  ;;  %v768_v35 = vmul.f32 %v1081_v26, %v1582_v4 }
 0x55e   :  { %v648_v27 = vpop.permute.xlu1 %647 }
 0x55f   :  { %v650_v29 = vmul.f32 %v648_v27, %v645_v25 }
 0x561   :  { %v656_v30 = vadd.f32 %v655_v28, %v650_v29 }
 0x562   :  { %v765_v32 = vpop.permute.xlu1 %764 }
 0x563   :  { %v767_v36 = vmul.f32 %v765_v32, %v762_v31  ;;  %658 = vrot.lane.b32.xlu0 %v656_v30, %s1333_s9 }
 0x565   :  { %v769_v0 = vadd.f32 %v768_v35, %v767_v36 }
 0x567   :  { %771 = vst.msk [vmem:[#allocation17 + $0xc] sm:$0xf] %vm336_vm2, %v769_v0  ;;  %773 = vrot.lane.b32.xlu1 %v769_v0, %s1334_s2 }
 0x5d5   :  { %v659_v37 = vpop.permute.xlu0 %658 }
 0x5d6   :  { %662 = vst.msk [vmem:[#allocation17 + $0x8] sm:$0xf] %vm336_vm2, %v659_v37 }
 0x5d9   :  { %v774_v38 = vpop.permute.xlu1 %773 }
 0x5da   :  { %v776_v39 = vsel %vm189_vm1, %v659_v37, %v774_v38 }
 0x5db   :  { %v777_v40 = vpack.c.bf16 %v776_v39, %v776_v39 }
 0x5dd   :  { %996 = vmatmul.mubr.msk.bf16.vlgmr.msra.gmra.mrb[8].mxu1 %vm513_vm3, %v777_v40 }
 0x5de   :  { %1269 = shalt.err (!%p1266_p12)
}
 0x5df   :  { %s1270_s27 = scalar_lea.hbm %s1703_s13, 256 }
 0x5e0   :  { %p1271_p13 = scmp.ne.s32.totalorder %s1703_s13, %s1270_s27  ;;  %p1274_p0 = scmp.lt.u32.totalorder %s1270_s27, %s1703_s13 }
 0x5e2   :  { %p1276_p1 = pnand %p1274_p0, %p1271_p13 }
 0x5e4   :  { %1279 = shalt.err (!%p1276_p1)
}
 0x5e5   :  { %882 = dma.vmem_to_hbm [thread:$0]  %s877_s21, 256, %s1703_s13, [#allocation18], %s1317_s18, %s1317_s18, %s1318_s19  }
 0x5e6   :  { %v932_v4 = vld [vmem:[%s1701_s11] ss:$0 sm:$0xff]  ;;  %s1336_s23 = smov [#allocation16]  }
 0x5e7   :  { %s867_s14 = sshll.u32 %s1336_s23, 4  ;;  %s868_s14 = int_to_ptr.vmem [resolvable:$true] %s867_s14 }
 0x5e8   :  { %s1280_s16 = scalar_lea.vmem %s868_s14, 64  ;;  %p1285_p3 = scmp.lt.s32.totalorder %s868_s14, %s868_s14 }
 0x5e9   :  { %p1281_p2 = scmp.ne.s32.totalorder %s868_s14, %s1280_s16  ;;  %p1286_p4 = scmp.lt.s32.totalorder %s1280_s16, %s1280_s16 }
 0x5eb   :  { %p1287_p5 = por %p1286_p4, %p1285_p3 }
 0x5ed   :  { %p1288_p6 = pnand %p1287_p5, %p1281_p2 }
 0x6b0   :  { %v854_v41 = vpop.f32.mrb[8].mxu1 }
 0x6b1   :  { %v855_v42 = vadd.f32 %v932_v4, %v854_v41  ;;  %v997_v43 = vpop.f32.mrb[9].mxu1 }
 0x6b2   :  { %v857_v14 = vpop.f32.mrb[10].mxu1 }
 0x6b3   :  { %860 = vst.msk [vmem:[#allocation16] sm:$0xf] %vm336_vm2, %v855_v42  ;;  %v998_v44 = vpop.f32.mrb[11].mxu1 }
 0x6b4   :  { %1291 = shalt.err (!%p1288_p6)
}
 0x6b5   :  { %s1292_s11 = scalar_lea.hbm %s1702_s12, 64 }
 0x6b6   :  { %p1293_p7 = scmp.ne.s32.totalorder %s1702_s12, %s1292_s11  ;;  %p1296_p8 = scmp.lt.u32.totalorder %s1292_s11, %s1702_s12 }
 0x6b8   :  { %p1298_p9 = pnand %p1296_p8, %p1293_p7 }
 0x6ba   :  { %1301 = shalt.err (!%p1298_p9)
}
 0x6bb   :  { %870 = dma.vmem_to_hbm [thread:$0]  %s868_s14, 64, %s1702_s12, [#allocation4]  }
 0x6bc   :  { %1312 = dma.done.wait [#allocation4], 64  }
 0x6bd   :  { %1313 = vsyncadd [#allocation4], 4294967232 }
 0x6be   :  { %1314 = dma.done.wait [#allocation18], 256  }
 0x6bf   :  { %1315 = vsyncadd [#allocation18], 4294967040 }
 0x6c0   :  { %889 = vsyncpa [#allocation3], 1 }
 0x6c1   :  { %890 = vsyncpa [#allocation6], 1 }
 0x6c2   :  { %891 = vsyncpa [#allocation9], 1 }
 0x6c3   :  { %892 = vsyncpa [#allocation12], 1 }
 0x6c4   :  { %893 = vsyncpa [#allocation15], 1 }
 0x6c5   :  { %894 = vsyncpa [#allocation4], 1 }
 0x6c6   :  { %895 = vsyncpa [#allocation18], 1 }

</bundles_post_ra>
